<compile_context>
chip_gen: v6e
topology: v6e:2x2x1
jax: 0.10.0
libtpu: 0.0.40
codegen_flags: <defaults>
</compile_context>

<pallas_src>
import functools

import jax
import jax.numpy as jnp
import numpy as np
from jax import lax
from jax.experimental import pallas as pl
from jax.experimental.pallas import tpu as pltpu


def _residual_kernel(x_ref, w1_ref, w2_ref, out_ref, p1_scr, p2_scr, *, H, W):
    """One batch-chunk per grid step.

    x_ref  : (C_in, L)  f32   L = images_per_block * H * W  (lane-dense)
    w1_ref : (C_mid, 9*C_in + 1)          bf16  [conv1 taps | b1]
    w2_ref : (C_out, 9*C_mid + C_in + 1)  bf16  [conv2 taps | wd | b2+bd]
    out_ref: (C_out, L) f32
    p1_scr : (9*C_in + 1, L)          f32 VMEM  conv1 im2col patches (+ones row)
    p2_scr : (9*C_mid + C_in + 1, L)  f32 VMEM  conv2 patches (+x rows, +ones row)
    """
    HW = H * W
    L = x_ref.shape[-1]
    C_in = x_ref.shape[0]
    C_mid = w1_ref.shape[0]
    x = x_ref[...]                                    # (C_in, L) f32

    # Per-lane, PER-IMAGE (row, col) of the output pixel.  With several images
    # sharing the lane axis, the edge masks below also kill any tap whose
    # rolled source would leak across an image boundary.
    lane = lax.broadcasted_iota(jnp.int32, (1, L), 1)
    if (HW & (HW - 1)) == 0:                          # power of two -> bit ops
        li = jnp.bitwise_and(lane, HW - 1)
    else:
        li = lane % HW
    if (W & (W - 1)) == 0:
        col = jnp.bitwise_and(li, W - 1)
        row = jnp.right_shift(li, W.bit_length() - 1)
    else:
        row = li // W
        col = li - row * W

    # 3x3 taps: (static lane-roll shift, f32 edge mask or None), built once and
    # reused by both convs.
    taps = []
    for dy in range(3):
        for dx in range(3):
            shift = ((1 - dy) * W + (1 - dx)) % L
            conds = []
            if dy == 0:
                conds.append(row >= 1)
            elif dy == 2:
                conds.append(row <= H - 2)
            if dx == 0:
                conds.append(col >= 1)
            elif dx == 2:
                conds.append(col <= W - 2)
            mask = None
            if conds:
                m = conds[0]
                for c in conds[1:]:
                    m = jnp.logical_and(m, c)
                mask = m.astype(jnp.float32)
            taps.append((shift, mask))

    ones_row = jnp.ones((1, L), jnp.float32)

    def im2col(a, scr, c):
        # scr rows [k*c:(k+1)*c] = masked tap k of `a` (tap-major,
        # channel-minor, matching the weight flattening in the wrapper).
        for k, (shift, mask) in enumerate(taps):
            t = pltpu.roll(a, shift=shift, axis=1) if shift else a
            if mask is not None:
                t = t * mask
            scr[k * c:(k + 1) * c, :] = t

    # ---- conv1 (3x3 SAME) + bias fused: one bf16 MXU matmul, then ReLU -----
    im2col(x, p1_scr, C_in)
    p1_scr[9 * C_in:9 * C_in + 1, :] = ones_row               # fused bias row
    h = jnp.dot(w1_ref[...], p1_scr[...].astype(jnp.bfloat16),
                preferred_element_type=jnp.float32)
    h = jnp.maximum(h, 0.0)                                   # (C_mid, L) f32

    # ---- conv2 (3x3 SAME) + bias + 1x1 downsample + bias: one matmul -------
    im2col(h, p2_scr, C_mid)
    r0 = 9 * C_mid
    p2_scr[r0:r0 + C_in, :] = x                               # 1x1 downsample rows
    p2_scr[r0 + C_in:r0 + C_in + 1, :] = ones_row             # fused (b2+bd) row
    out = jnp.dot(w2_ref[...], p2_scr[...].astype(jnp.bfloat16),
                  preferred_element_type=jnp.float32)

    # Single lane-dense store of the whole block.
    out_ref[...] = out.astype(out_ref.dtype)


def residual_forward(x_nchw, params, *, num_blocks=1):
    """x_nchw: (N, C_in, H, W) f32 -> (N, C_out, H, W) f32.

    num_blocks: grid steps over the batch.  1 = whole batch in one step
    (best on single-TensorCore v5e/v6e); 2 = one half-batch per v7x
    TensorCore via the 'parallel' grid axis.
    """
    w1, b1, w2, b2, wd, bd = (params[k] for k in ("w1", "b1", "w2", "b2", "wd", "bd"))
    N, C_in, H, W = x_nchw.shape
    C_mid = w1.shape[-1]
    C_out = w2.shape[-1]
    HW = H * W
    if N % num_blocks:
        raise ValueError("num_blocks must divide the batch size")
    L = (N // num_blocks) * HW                         # lanes per grid step

    # Channels on sublanes, (image, pixel) on lanes — one tiny wrapper-side
    # transpose (layout plumbing), no padding.
    x_lanes = x_nchw.reshape(N, C_in, HW).transpose(1, 0, 2).reshape(C_in, N * HW)

    # Fused weight matrices (trace time), bf16 for the full-rate MXU path:
    #   conv1 : [ w1 (tap-major, in-channel-minor) | b1        ]
    #   conv2 : [ w2 (tap-major, in-channel-minor) | wd | b2+bd ]
    K1 = 9 * C_in + 1
    K2 = 9 * C_mid + C_in + 1
    w1f = jnp.concatenate(
        [w1.reshape(9 * C_in, C_mid).T, b1.reshape(C_mid, 1)],
        axis=1).astype(jnp.bfloat16)                   # (C_mid, K1)
    w2f = jnp.concatenate(
        [w2.reshape(9 * C_mid, C_out).T, wd.T, (b2 + bd).reshape(C_out, 1)],
        axis=1).astype(jnp.bfloat16)                   # (C_out, K2)

    kernel = functools.partial(_residual_kernel, H=H, W=W)

    # TODO(synk): at real network sizes (large H*W / C_mid) add a spatial tile
    # axis (same roll+mask trick per tile) so the (K2, L) scratch stays inside
    # v7x's 64 MiB VMEM; irrelevant at this toy size.
    out_lanes = pl.pallas_call(
        kernel,
        out_shape=jax.ShapeDtypeStruct((C_out, N * HW), jnp.float32),
        grid_spec=pltpu.PrefetchScalarGridSpec(
            num_scalar_prefetch=0,
            grid=(num_blocks,),
            in_specs=[
                pl.BlockSpec((C_in, L), lambda b: (0, b)),
                pl.BlockSpec((C_mid, K1), lambda b: (0, 0)),
                pl.BlockSpec((C_out, K2), lambda b: (0, 0)),
            ],
            out_specs=pl.BlockSpec((C_out, L), lambda b: (0, b)),
            scratch_shapes=[
                pltpu.VMEM((K1, L), jnp.float32),
                pltpu.VMEM((K2, L), jnp.float32),
            ],
        ),
        compiler_params=pltpu.CompilerParams(
            dimension_semantics=("parallel",)),
    )(x_lanes, w1f, w2f)

    # (C_out, N*HW) -> (N, C_out, H, W): free reshape + one small transpose.
    return out_lanes.reshape(C_out, N, H, W).transpose(1, 0, 2, 3)


def reference_forward(x_nchw, params):
    """Pure-JAX f32 reference (lax.conv) matching PyTorch semantics."""
    w1, b1, w2, b2, wd, bd = (params[k] for k in ("w1", "b1", "w2", "b2", "wd", "bd"))
    x = jnp.transpose(x_nchw, (0, 2, 3, 1))  # NHWC
    dn = ("NHWC", "HWIO", "NHWC")

    h = lax.conv_general_dilated(x, w1, (1, 1), "SAME", dimension_numbers=dn)
    h = jnp.maximum(h + b1.reshape(1, 1, 1, -1), 0.0)
    h = lax.conv_general_dilated(h, w2, (1, 1), "SAME", dimension_numbers=dn)
    h = h + b2.reshape(1, 1, 1, -1)

    ds = lax.conv_general_dilated(x, wd.reshape(1, 1, *wd.shape), (1, 1), "SAME",
                                  dimension_numbers=dn)
    ds = ds + bd.reshape(1, 1, 1, -1)
    return jnp.transpose(h + ds, (0, 3, 1, 2))  # NCHW


def make_params(key, C_in, C_mid, C_out):
    ks = jax.random.split(key, 6)
    s1 = 1.0 / np.sqrt(3 * 3 * C_in)
    s2 = 1.0 / np.sqrt(3 * 3 * C_mid)
    sd = 1.0 / np.sqrt(C_in)
    return {
        "w1": jax.random.uniform(ks[0], (3, 3, C_in, C_mid), jnp.float32, -s1, s1),
        "b1": jax.random.uniform(ks[1], (1, C_mid), jnp.float32, -s1, s1),
        "w2": jax.random.uniform(ks[2], (3, 3, C_mid, C_out), jnp.float32, -s2, s2),
        "b2": jax.random.uniform(ks[3], (1, C_out), jnp.float32, -s2, s2),
        "wd": jax.random.uniform(ks[4], (C_in, C_out), jnp.float32, -sd, sd),
        "bd": jax.random.uniform(ks[5], (1, C_out), jnp.float32, -sd, sd),
    }


if __name__ == "__main__":
    key = jax.random.PRNGKey(0)
    kx, kp = jax.random.split(key)

    N, C_in, H, W = 2, 4, 16, 16
    C_mid, C_out = 8, 8

    x = jax.random.normal(kx, (N, C_in, H, W), jnp.float32)  # NCHW like PyTorch
    params = make_params(kp, C_in, C_mid, C_out)

    ref = jax.block_until_ready(reference_forward(x, params))

    # Single grid step: whole batch in the lane axis (v5e / v6e sweet spot).
    out1 = jax.block_until_ready(residual_forward(x, params, num_blocks=1))
    # Two 'parallel' grid steps: one half-batch per TensorCore (v7x megacore).
    out2 = jax.block_until_ready(residual_forward(x, params, num_blocks=2))

    # bf16 MXU feed with f32 accumulation -> tolerance loosened vs f32 reference.
    np.testing.assert_allclose(np.asarray(out1), np.asarray(ref), rtol=2e-2, atol=2e-2)
    np.testing.assert_allclose(np.asarray(out2), np.asarray(ref), rtol=2e-2, atol=2e-2)

    print("KERNEL_OK")
</pallas_src>

<mosaic_0001>
module attributes {stable_mosaic.version = 11 : i64} {
  func.func @_residual_kernel(%arg0: i32, %arg1: memref<4x512xf32, #tpu.memory_space<vmem>>, %arg2: memref<8x37xbf16, #tpu.memory_space<vmem>>, %arg3: memref<8x77xbf16, #tpu.memory_space<vmem>>, %arg4: memref<8x512xf32, #tpu.memory_space<vmem>>, %arg5: memref<37x512xf32, #tpu.memory_space<vmem>>, %arg6: memref<77x512xf32, #tpu.memory_space<vmem>>) attributes {dimension_semantics = [#tpu.dimension_semantics<parallel>], iteration_bounds = array<i64: 1>, scalar_prefetch = 0 : i64, scratch_operands = 2 : i64, tpu.core_type = #tpu.core_type<tc>, window_params = [{transform_indices = @transform_0, window_bounds = array<i64: 4, 512>}, {pipeline_mode = #tpu.pipeline_mode<synchronous>, transform_indices = @transform_1, window_bounds = array<i64: 8, 37>}, {pipeline_mode = #tpu.pipeline_mode<synchronous>, transform_indices = @transform_2, window_bounds = array<i64: 8, 77>}, {transform_indices = @transform_3, window_bounds = array<i64: 8, 512>}]} {
    %c0 = arith.constant 0 : index
    %c0_0 = arith.constant 0 : index
    %0 = vector.load %arg1[%c0, %c0_0] : memref<4x512xf32, #tpu.memory_space<vmem>>, vector<4x512xf32>
    %1 = tpu.iota {dimensions = array<i32: 1>} : vector<1x512xi32>
    %c255_i32 = arith.constant 255 : i32
    %2 = vector.broadcast %c255_i32 : i32 to vector<1x512xi32>
    %3 = arith.andi %1, %2 : vector<1x512xi32>
    %c15_i32 = arith.constant 15 : i32
    %4 = vector.broadcast %c15_i32 : i32 to vector<1x512xi32>
    %5 = arith.andi %3, %4 : vector<1x512xi32>
    %c4_i32 = arith.constant 4 : i32
    %6 = vector.broadcast %c4_i32 : i32 to vector<1x512xi32>
    %7 = arith.shrsi %3, %6 : vector<1x512xi32>
    %c1_i32 = arith.constant 1 : i32
    %8 = vector.broadcast %c1_i32 : i32 to vector<1x512xi32>
    %9 = arith.cmpi sge, %7, %8 : vector<1x512xi32>
    %c1_i32_1 = arith.constant 1 : i32
    %10 = vector.broadcast %c1_i32_1 : i32 to vector<1x512xi32>
    %11 = arith.cmpi sge, %5, %10 : vector<1x512xi32>
    %12 = arith.andi %9, %11 : vector<1x512xi1>
    %13 = arith.extui %12 : vector<1x512xi1> to vector<1x512xi32>
    %14 = arith.sitofp %13 : vector<1x512xi32> to vector<1x512xf32>
    %c1_i32_2 = arith.constant 1 : i32
    %15 = vector.broadcast %c1_i32_2 : i32 to vector<1x512xi32>
    %16 = arith.cmpi sge, %7, %15 : vector<1x512xi32>
    %17 = arith.extui %16 : vector<1x512xi1> to vector<1x512xi32>
    %18 = arith.sitofp %17 : vector<1x512xi32> to vector<1x512xf32>
    %c1_i32_3 = arith.constant 1 : i32
    %19 = vector.broadcast %c1_i32_3 : i32 to vector<1x512xi32>
    %20 = arith.cmpi sge, %7, %19 : vector<1x512xi32>
    %c14_i32 = arith.constant 14 : i32
    %21 = vector.broadcast %c14_i32 : i32 to vector<1x512xi32>
    %22 = arith.cmpi sle, %5, %21 : vector<1x512xi32>
    %23 = arith.andi %20, %22 : vector<1x512xi1>
    %24 = arith.extui %23 : vector<1x512xi1> to vector<1x512xi32>
    %25 = arith.sitofp %24 : vector<1x512xi32> to vector<1x512xf32>
    %c1_i32_4 = arith.constant 1 : i32
    %26 = vector.broadcast %c1_i32_4 : i32 to vector<1x512xi32>
    %27 = arith.cmpi sge, %5, %26 : vector<1x512xi32>
    %28 = arith.extui %27 : vector<1x512xi1> to vector<1x512xi32>
    %29 = arith.sitofp %28 : vector<1x512xi32> to vector<1x512xf32>
    %c14_i32_5 = arith.constant 14 : i32
    %30 = vector.broadcast %c14_i32_5 : i32 to vector<1x512xi32>
    %31 = arith.cmpi sle, %5, %30 : vector<1x512xi32>
    %32 = arith.extui %31 : vector<1x512xi1> to vector<1x512xi32>
    %33 = arith.sitofp %32 : vector<1x512xi32> to vector<1x512xf32>
    %c14_i32_6 = arith.constant 14 : i32
    %34 = vector.broadcast %c14_i32_6 : i32 to vector<1x512xi32>
    %35 = arith.cmpi sle, %7, %34 : vector<1x512xi32>
    %c1_i32_7 = arith.constant 1 : i32
    %36 = vector.broadcast %c1_i32_7 : i32 to vector<1x512xi32>
    %37 = arith.cmpi sge, %5, %36 : vector<1x512xi32>
    %38 = arith.andi %35, %37 : vector<1x512xi1>
    %39 = arith.extui %38 : vector<1x512xi1> to vector<1x512xi32>
    %40 = arith.sitofp %39 : vector<1x512xi32> to vector<1x512xf32>
    %c14_i32_8 = arith.constant 14 : i32
    %41 = vector.broadcast %c14_i32_8 : i32 to vector<1x512xi32>
    %42 = arith.cmpi sle, %7, %41 : vector<1x512xi32>
    %43 = arith.extui %42 : vector<1x512xi1> to vector<1x512xi32>
    %44 = arith.sitofp %43 : vector<1x512xi32> to vector<1x512xf32>
    %c14_i32_9 = arith.constant 14 : i32
    %45 = vector.broadcast %c14_i32_9 : i32 to vector<1x512xi32>
    %46 = arith.cmpi sle, %7, %45 : vector<1x512xi32>
    %c14_i32_10 = arith.constant 14 : i32
    %47 = vector.broadcast %c14_i32_10 : i32 to vector<1x512xi32>
    %48 = arith.cmpi sle, %5, %47 : vector<1x512xi32>
    %49 = arith.andi %46, %48 : vector<1x512xi1>
    %50 = arith.extui %49 : vector<1x512xi1> to vector<1x512xi32>
    %51 = arith.sitofp %50 : vector<1x512xi32> to vector<1x512xf32>
    %cst = arith.constant 1.000000e+00 : f32
    %52 = vector.broadcast %cst : f32 to vector<1x512xf32>
    %c17_i32 = arith.constant 17 : i32
    %53 = tpu.dynamic_rotate %0 by %c17_i32 dim 1 : vector<4x512xf32>, i32 -> vector<4x512xf32>
    %54 = vector.broadcast %14 : vector<1x512xf32> to vector<4x512xf32>
    %55 = arith.mulf %53, %54 : vector<4x512xf32>
    %c0_11 = arith.constant 0 : index
    %c0_12 = arith.constant 0 : index
    %56 = vector.load %arg5[%c0_11, %c0_12] : memref<37x512xf32, #tpu.memory_space<vmem>>, vector<4x512xf32>
    tpu.vector_store %arg5[%c0_11, %c0_12], %55 {strides = array<i32>} : memref<37x512xf32, #tpu.memory_space<vmem>>, vector<4x512xf32>,
    %c16_i32 = arith.constant 16 : i32
    %57 = tpu.dynamic_rotate %0 by %c16_i32 dim 1 : vector<4x512xf32>, i32 -> vector<4x512xf32>
    %58 = vector.broadcast %18 : vector<1x512xf32> to vector<4x512xf32>
    %59 = arith.mulf %57, %58 : vector<4x512xf32>
    %c4 = arith.constant 4 : index
    %c0_13 = arith.constant 0 : index
    %60 = vector.load %arg5[%c4, %c0_13] : memref<37x512xf32, #tpu.memory_space<vmem>>, vector<4x512xf32>
    tpu.vector_store %arg5[%c4, %c0_13], %59 {strides = array<i32>} : memref<37x512xf32, #tpu.memory_space<vmem>>, vector<4x512xf32>,
    %c15_i32_14 = arith.constant 15 : i32
    %61 = tpu.dynamic_rotate %0 by %c15_i32_14 dim 1 : vector<4x512xf32>, i32 -> vector<4x512xf32>
    %62 = vector.broadcast %25 : vector<1x512xf32> to vector<4x512xf32>
    %63 = arith.mulf %61, %62 : vector<4x512xf32>
    %c8 = arith.constant 8 : index
    %c0_15 = arith.constant 0 : index
    %64 = vector.load %arg5[%c8, %c0_15] : memref<37x512xf32, #tpu.memory_space<vmem>>, vector<4x512xf32>
    tpu.vector_store %arg5[%c8, %c0_15], %63 {strides = array<i32>} : memref<37x512xf32, #tpu.memory_space<vmem>>, vector<4x512xf32>,
    %c1_i32_16 = arith.constant 1 : i32
    %65 = tpu.dynamic_rotate %0 by %c1_i32_16 dim 1 : vector<4x512xf32>, i32 -> vector<4x512xf32>
    %66 = vector.broadcast %29 : vector<1x512xf32> to vector<4x512xf32>
    %67 = arith.mulf %65, %66 : vector<4x512xf32>
    %c12 = arith.constant 12 : index
    %c0_17 = arith.constant 0 : index
    %68 = vector.load %arg5[%c12, %c0_17] : memref<37x512xf32, #tpu.memory_space<vmem>>, vector<4x512xf32>
    tpu.vector_store %arg5[%c12, %c0_17], %67 {strides = array<i32>} : memref<37x512xf32, #tpu.memory_space<vmem>>, vector<4x512xf32>,
    %c16 = arith.constant 16 : index
    %c0_18 = arith.constant 0 : index
    %69 = vector.load %arg5[%c16, %c0_18] : memref<37x512xf32, #tpu.memory_space<vmem>>, vector<4x512xf32>
    tpu.vector_store %arg5[%c16, %c0_18], %0 {strides = array<i32>} : memref<37x512xf32, #tpu.memory_space<vmem>>, vector<4x512xf32>,
    %c511_i32 = arith.constant 511 : i32
    %70 = tpu.dynamic_rotate %0 by %c511_i32 dim 1 : vector<4x512xf32>, i32 -> vector<4x512xf32>
    %71 = vector.broadcast %33 : vector<1x512xf32> to vector<4x512xf32>
    %72 = arith.mulf %70, %71 : vector<4x512xf32>
    %c20 = arith.constant 20 : index
    %c0_19 = arith.constant 0 : index
    %73 = vector.load %arg5[%c20, %c0_19] : memref<37x512xf32, #tpu.memory_space<vmem>>, vector<4x512xf32>
    tpu.vector_store %arg5[%c20, %c0_19], %72 {strides = array<i32>} : memref<37x512xf32, #tpu.memory_space<vmem>>, vector<4x512xf32>,
    %c497_i32 = arith.constant 497 : i32
    %74 = tpu.dynamic_rotate %0 by %c497_i32 dim 1 : vector<4x512xf32>, i32 -> vector<4x512xf32>
    %75 = vector.broadcast %40 : vector<1x512xf32> to vector<4x512xf32>
    %76 = arith.mulf %74, %75 : vector<4x512xf32>
    %c24 = arith.constant 24 : index
    %c0_20 = arith.constant 0 : index
    %77 = vector.load %arg5[%c24, %c0_20] : memref<37x512xf32, #tpu.memory_space<vmem>>, vector<4x512xf32>
    tpu.vector_store %arg5[%c24, %c0_20], %76 {strides = array<i32>} : memref<37x512xf32, #tpu.memory_space<vmem>>, vector<4x512xf32>,
    %c496_i32 = arith.constant 496 : i32
    %78 = tpu.dynamic_rotate %0 by %c496_i32 dim 1 : vector<4x512xf32>, i32 -> vector<4x512xf32>
    %79 = vector.broadcast %44 : vector<1x512xf32> to vector<4x512xf32>
    %80 = arith.mulf %78, %79 : vector<4x512xf32>
    %c28 = arith.constant 28 : index
    %c0_21 = arith.constant 0 : index
    %81 = vector.load %arg5[%c28, %c0_21] : memref<37x512xf32, #tpu.memory_space<vmem>>, vector<4x512xf32>
    tpu.vector_store %arg5[%c28, %c0_21], %80 {strides = array<i32>} : memref<37x512xf32, #tpu.memory_space<vmem>>, vector<4x512xf32>,
    %c495_i32 = arith.constant 495 : i32
    %82 = tpu.dynamic_rotate %0 by %c495_i32 dim 1 : vector<4x512xf32>, i32 -> vector<4x512xf32>
    %83 = vector.broadcast %51 : vector<1x512xf32> to vector<4x512xf32>
    %84 = arith.mulf %82, %83 : vector<4x512xf32>
    %c32 = arith.constant 32 : index
    %c0_22 = arith.constant 0 : index
    %85 = vector.load %arg5[%c32, %c0_22] : memref<37x512xf32, #tpu.memory_space<vmem>>, vector<4x512xf32>
    tpu.vector_store %arg5[%c32, %c0_22], %84 {strides = array<i32>} : memref<37x512xf32, #tpu.memory_space<vmem>>, vector<4x512xf32>,
    %c36 = arith.constant 36 : index
    %c0_23 = arith.constant 0 : index
    %86 = vector.load %arg5[%c36, %c0_23] : memref<37x512xf32, #tpu.memory_space<vmem>>, vector<1x512xf32>
    tpu.vector_store %arg5[%c36, %c0_23], %52 {strides = array<i32>} : memref<37x512xf32, #tpu.memory_space<vmem>>, vector<1x512xf32>,
    %c0_24 = arith.constant 0 : index
    %c0_25 = arith.constant 0 : index
    %87 = vector.load %arg2[%c0_24, %c0_25] : memref<8x37xbf16, #tpu.memory_space<vmem>>, vector<8x37xbf16>
    %c0_26 = arith.constant 0 : index
    %c0_27 = arith.constant 0 : index
    %88 = vector.load %arg5[%c0_26, %c0_27] : memref<37x512xf32, #tpu.memory_space<vmem>>, vector<37x512xf32>
    %89 = arith.truncf %88 : vector<37x512xf32> to vector<37x512xbf16>
    %cst_28 = arith.constant dense<0.000000e+00> : vector<8x512xf32>
    %90 = tpu.matmul %87, %89, %cst_28 {dimension_numbers = #tpu.dot_dimension_numbers<[1], [0], [0], [1], [0, 0, 1, 1], [], []>} : vector<8x37xbf16>, vector<37x512xbf16>, vector<8x512xf32> -> vector<8x512xf32>
    %cst_29 = arith.constant 0.000000e+00 : f32
    %91 = vector.broadcast %cst_29 : f32 to vector<8x512xf32>
    %92 = arith.maximumf %90, %91 : vector<8x512xf32>
    %c17_i32_30 = arith.constant 17 : i32
    %93 = tpu.dynamic_rotate %92 by %c17_i32_30 dim 1 : vector<8x512xf32>, i32 -> vector<8x512xf32>
    %94 = vector.broadcast %14 : vector<1x512xf32> to vector<8x512xf32>
    %95 = arith.mulf %93, %94 : vector<8x512xf32>
    %c0_31 = arith.constant 0 : index
    %c0_32 = arith.constant 0 : index
    %96 = vector.load %arg6[%c0_31, %c0_32] : memref<77x512xf32, #tpu.memory_space<vmem>>, vector<8x512xf32>
    tpu.vector_store %arg6[%c0_31, %c0_32], %95 {strides = array<i32>} : memref<77x512xf32, #tpu.memory_space<vmem>>, vector<8x512xf32>,
    %c16_i32_33 = arith.constant 16 : i32
    %97 = tpu.dynamic_rotate %92 by %c16_i32_33 dim 1 : vector<8x512xf32>, i32 -> vector<8x512xf32>
    %98 = vector.broadcast %18 : vector<1x512xf32> to vector<8x512xf32>
    %99 = arith.mulf %97, %98 : vector<8x512xf32>
    %c8_34 = arith.constant 8 : index
    %c0_35 = arith.constant 0 : index
    %100 = vector.load %arg6[%c8_34, %c0_35] : memref<77x512xf32, #tpu.memory_space<vmem>>, vector<8x512xf32>
    tpu.vector_store %arg6[%c8_34, %c0_35], %99 {strides = array<i32>} : memref<77x512xf32, #tpu.memory_space<vmem>>, vector<8x512xf32>,
    %c15_i32_36 = arith.constant 15 : i32
    %101 = tpu.dynamic_rotate %92 by %c15_i32_36 dim 1 : vector<8x512xf32>, i32 -> vector<8x512xf32>
    %102 = vector.broadcast %25 : vector<1x512xf32> to vector<8x512xf32>
    %103 = arith.mulf %101, %102 : vector<8x512xf32>
    %c16_37 = arith.constant 16 : index
    %c0_38 = arith.constant 0 : index
    %104 = vector.load %arg6[%c16_37, %c0_38] : memref<77x512xf32, #tpu.memory_space<vmem>>, vector<8x512xf32>
    tpu.vector_store %arg6[%c16_37, %c0_38], %103 {strides = array<i32>} : memref<77x512xf32, #tpu.memory_space<vmem>>, vector<8x512xf32>,
    %c1_i32_39 = arith.constant 1 : i32
    %105 = tpu.dynamic_rotate %92 by %c1_i32_39 dim 1 : vector<8x512xf32>, i32 -> vector<8x512xf32>
    %106 = vector.broadcast %29 : vector<1x512xf32> to vector<8x512xf32>
    %107 = arith.mulf %105, %106 : vector<8x512xf32>
    %c24_40 = arith.constant 24 : index
    %c0_41 = arith.constant 0 : index
    %108 = vector.load %arg6[%c24_40, %c0_41] : memref<77x512xf32, #tpu.memory_space<vmem>>, vector<8x512xf32>
    tpu.vector_store %arg6[%c24_40, %c0_41], %107 {strides = array<i32>} : memref<77x512xf32, #tpu.memory_space<vmem>>, vector<8x512xf32>,
    %c32_42 = arith.constant 32 : index
    %c0_43 = arith.constant 0 : index
    %109 = vector.load %arg6[%c32_42, %c0_43] : memref<77x512xf32, #tpu.memory_space<vmem>>, vector<8x512xf32>
    tpu.vector_store %arg6[%c32_42, %c0_43], %92 {strides = array<i32>} : memref<77x512xf32, #tpu.memory_space<vmem>>, vector<8x512xf32>,
    %c511_i32_44 = arith.constant 511 : i32
    %110 = tpu.dynamic_rotate %92 by %c511_i32_44 dim 1 : vector<8x512xf32>, i32 -> vector<8x512xf32>
    %111 = vector.broadcast %33 : vector<1x512xf32> to vector<8x512xf32>
    %112 = arith.mulf %110, %111 : vector<8x512xf32>
    %c40 = arith.constant 40 : index
    %c0_45 = arith.constant 0 : index
    %113 = vector.load %arg6[%c40, %c0_45] : memref<77x512xf32, #tpu.memory_space<vmem>>, vector<8x512xf32>
    tpu.vector_store %arg6[%c40, %c0_45], %112 {strides = array<i32>} : memref<77x512xf32, #tpu.memory_space<vmem>>, vector<8x512xf32>,
    %c497_i32_46 = arith.constant 497 : i32
    %114 = tpu.dynamic_rotate %92 by %c497_i32_46 dim 1 : vector<8x512xf32>, i32 -> vector<8x512xf32>
    %115 = vector.broadcast %40 : vector<1x512xf32> to vector<8x512xf32>
    %116 = arith.mulf %114, %115 : vector<8x512xf32>
    %c48 = arith.constant 48 : index
    %c0_47 = arith.constant 0 : index
    %117 = vector.load %arg6[%c48, %c0_47] : memref<77x512xf32, #tpu.memory_space<vmem>>, vector<8x512xf32>
    tpu.vector_store %arg6[%c48, %c0_47], %116 {strides = array<i32>} : memref<77x512xf32, #tpu.memory_space<vmem>>, vector<8x512xf32>,
    %c496_i32_48 = arith.constant 496 : i32
    %118 = tpu.dynamic_rotate %92 by %c496_i32_48 dim 1 : vector<8x512xf32>, i32 -> vector<8x512xf32>
    %119 = vector.broadcast %44 : vector<1x512xf32> to vector<8x512xf32>
    %120 = arith.mulf %118, %119 : vector<8x512xf32>
    %c56 = arith.constant 56 : index
    %c0_49 = arith.constant 0 : index
    %121 = vector.load %arg6[%c56, %c0_49] : memref<77x512xf32, #tpu.memory_space<vmem>>, vector<8x512xf32>
    tpu.vector_store %arg6[%c56, %c0_49], %120 {strides = array<i32>} : memref<77x512xf32, #tpu.memory_space<vmem>>, vector<8x512xf32>,
    %c495_i32_50 = arith.constant 495 : i32
    %122 = tpu.dynamic_rotate %92 by %c495_i32_50 dim 1 : vector<8x512xf32>, i32 -> vector<8x512xf32>
    %123 = vector.broadcast %51 : vector<1x512xf32> to vector<8x512xf32>
    %124 = arith.mulf %122, %123 : vector<8x512xf32>
    %c64 = arith.constant 64 : index
    %c0_51 = arith.constant 0 : index
    %125 = vector.load %arg6[%c64, %c0_51] : memref<77x512xf32, #tpu.memory_space<vmem>>, vector<8x512xf32>
    tpu.vector_store %arg6[%c64, %c0_51], %124 {strides = array<i32>} : memref<77x512xf32, #tpu.memory_space<vmem>>, vector<8x512xf32>,
    %c72 = arith.constant 72 : index
    %c0_52 = arith.constant 0 : index
    %126 = vector.load %arg6[%c72, %c0_52] : memref<77x512xf32, #tpu.memory_space<vmem>>, vector<4x512xf32>
    tpu.vector_store %arg6[%c72, %c0_52], %0 {strides = array<i32>} : memref<77x512xf32, #tpu.memory_space<vmem>>, vector<4x512xf32>,
    %c76 = arith.constant 76 : index
    %c0_53 = arith.constant 0 : index
    %127 = vector.load %arg6[%c76, %c0_53] : memref<77x512xf32, #tpu.memory_space<vmem>>, vector<1x512xf32>
    tpu.vector_store %arg6[%c76, %c0_53], %52 {strides = array<i32>} : memref<77x512xf32, #tpu.memory_space<vmem>>, vector<1x512xf32>,
    %c0_54 = arith.constant 0 : index
    %c0_55 = arith.constant 0 : index
    %128 = vector.load %arg3[%c0_54, %c0_55] : memref<8x77xbf16, #tpu.memory_space<vmem>>, vector<8x77xbf16>
    %c0_56 = arith.constant 0 : index
    %c0_57 = arith.constant 0 : index
    %129 = vector.load %arg6[%c0_56, %c0_57] : memref<77x512xf32, #tpu.memory_space<vmem>>, vector<77x512xf32>
    %130 = arith.truncf %129 : vector<77x512xf32> to vector<77x512xbf16>
    %cst_58 = arith.constant dense<0.000000e+00> : vector<8x512xf32>
    %131 = tpu.matmul %128, %130, %cst_58 {dimension_numbers = #tpu.dot_dimension_numbers<[1], [0], [0], [1], [0, 0, 1, 1], [], []>} : vector<8x77xbf16>, vector<77x512xbf16>, vector<8x512xf32> -> vector<8x512xf32>
    %c0_59 = arith.constant 0 : index
    %c0_60 = arith.constant 0 : index
    %132 = vector.load %arg4[%c0_59, %c0_60] : memref<8x512xf32, #tpu.memory_space<vmem>>, vector<8x512xf32>
    tpu.vector_store %arg4[%c0_59, %c0_60], %131 {strides = array<i32>} : memref<8x512xf32, #tpu.memory_space<vmem>>, vector<8x512xf32>,
    return
  }
  func.func @transform_0(%arg0: i32) -> (i32, i32) {
    %c0_i32 = arith.constant 0 : i32
    %c0_i32_0 = arith.constant 0 : i32
    return %c0_i32, %arg0 : i32, i32
  }
  func.func @transform_1(%arg0: i32) -> (i32, i32) {
    %c0_i32 = arith.constant 0 : i32
    %c0_i32_0 = arith.constant 0 : i32
    %c0_i32_1 = arith.constant 0 : i32
    return %c0_i32, %c0_i32_0 : i32, i32
  }
  func.func @transform_2(%arg0: i32) -> (i32, i32) {
    %c0_i32 = arith.constant 0 : i32
    %c0_i32_0 = arith.constant 0 : i32
    %c0_i32_1 = arith.constant 0 : i32
    return %c0_i32, %c0_i32_0 : i32, i32
  }
  func.func @transform_3(%arg0: i32) -> (i32, i32) {
    %c0_i32 = arith.constant 0 : i32
    %c0_i32_0 = arith.constant 0 : i32
    return %c0_i32, %arg0 : i32, i32
  }
}

</mosaic_0001>

<bundles_post_ra>
// kernel: tpu_custom_call.1
= control target key start
LH: loop header
LB: loop body
LE: loop exit
PB: predicated region body
PF: predicated region fallthrough
CT: control target
= control target key end

     0   :  { %8 = vsyncpa [#allocation5], 0  ;;  %s1631_s0 = inlined_call_operand.hbm [shape: f32[4,512], index: 0, kind: input, shape index: {}]   ;;  %s1632_s1 = inlined_call_operand.hbm [shape: bf16[8,37], index: 1, kind: input, shape index: {}]   ;;  %s1633_s2 = inlined_call_operand.hbm [shape: bf16[8,77], index: 2, kind: input, shape index: {}]   ;;  %s1634_s3 = inlined_call_operand.hbm [shape: f32[8,512], index: 3, kind: output, shape index: {}]  }
   0x1   :  { %9 = vsyncpa [#allocation8], 0 }
   0x2   :  { %10 = vsyncpa [#allocation6], 0  ;;  %s1032_s12 = smov [#allocation7]   ;;  %s1033_s14 = smov [#allocation4]  }
   0x3   :  { %s27_s13 = sshll.u32 %s1032_s12, 4  ;;  %s17_s15 = sshll.u32 %s1033_s14, 4  ;;  %s28_s13 = int_to_ptr.vmem [resolvable:$true] %s27_s13  ;;  %s18_s15 = int_to_ptr.vmem [resolvable:$true] %s17_s15 }
   0x4   :  { %s954_s16 = scalar_lea.vmem %s28_s13, 64  ;;  %p959_p1 = scmp.lt.s32.totalorder %s28_s13, %s28_s13 }
   0x5   :  { %p955_p0 = scmp.ne.s32.totalorder %s28_s13, %s954_s16  ;;  %p960_p2 = scmp.lt.s32.totalorder %s954_s16, %s954_s16 }
   0x7   :  { %p961_p3 = por %p960_p2, %p959_p1 }
   0x9   :  { %p962_p4 = pnand %p961_p3, %p955_p0 }
   0xb   :  { %965 = shalt.err (!%p962_p4)
}
   0xc   :  { %30 = dma.hbm_to_vmem [thread:$0]  %s1632_s1, 64, %s28_s13, [#allocation8]  }
   0xd   :  { %s974_s19 = scalar_lea.vmem %s18_s15, 256  ;;  %p979_p6 = scmp.lt.s32.totalorder %s18_s15, %s18_s15 }
   0xe   :  { %p975_p5 = scmp.ne.s32.totalorder %s18_s15, %s974_s19  ;;  %p980_p7 = scmp.lt.s32.totalorder %s974_s19, %s974_s19 }
  0x10   :  { %p981_p8 = por %p980_p7, %p979_p6 }
  0x12   :  { %p982_p9 = pnand %p981_p8, %p975_p5 }
  0x14   :  { %985 = shalt.err (!%p982_p9)
}
  0x15   :  { %20 = dma.hbm_to_vmem [thread:$0]  %s1631_s0, 256, %s18_s15, [#allocation5]  }
  0x16   :  { %s1034_s22 = smov [#allocation9]  }
  0x17   :  { %s37_s23 = sshll.u32 %s1034_s22, 4  ;;  %s38_s23 = int_to_ptr.vmem [resolvable:$true] %s37_s23 }
  0x18   :  { %s994_s24 = scalar_lea.vmem %s38_s23, 64  ;;  %p999_p11 = scmp.lt.s32.totalorder %s38_s23, %s38_s23 }
  0x19   :  { %p995_p10 = scmp.ne.s32.totalorder %s38_s23, %s994_s24  ;;  %p1000_p12 = scmp.lt.s32.totalorder %s994_s24, %s994_s24 }
  0x1b   :  { %p1001_p13 = por %p1000_p12, %p999_p11 }
  0x1d   :  { %p1002_p0 = pnand %p1001_p13, %p995_p10 }
  0x1f   :  { %1005 = shalt.err (!%p1002_p0)
}
  0x20   :  { %40 = dma.hbm_to_vmem [thread:$0]  %s1633_s2, 64, %s38_s23, [#allocation8]  }
  0x21   :  { %1026 = dma.done.wait [#allocation5], 256  }
  0x22   :  { %1027 = vsyncadd [#allocation5], 4294967040 }
  0x23   :  { %1028 = dma.done.wait [#allocation8], 128  }
  0x24   :  { %1029 = vsyncadd [#allocation8], 4294967168  ;;  %v53_v0 = vlaneseq  ;;  %v1035_v1 = vmov 1.0   ;;  %v52_v2 = vld [vmem:[#allocation4 + $0x8] sm:$0xff]  ;;  %v51_v3 = vld [vmem:[#allocation4] sm:$0xff]  ;;  %s1036_s0 = smov 111  }
  0x25   :  { %375 = vrot.lane.b32.xlu1 %v52_v2, %s1036_s0  ;;  %282 = vst [vmem:[#allocation2 + $0x50] sm:$0xf] %v52_v2  ;;  %704 = vst [vmem:[#allocation3 + $0x130] sm:$0xf] %v52_v2  ;;  %371 = vrot.lane.b32.xlu0 %v51_v3, %s1036_s0  ;;  %v169_v4 = vcombine.high %v52_v2, %v52_v2  ;;  %v168_v5 = vcombine.high %v51_v3, %v51_v3  ;;  %s1037_s2 = smov 127   ;;  %s1038_s26 = smov 112  }
  0x26   :  { %vm394_vm0 = vcmp.lt.s32.totalorder %v53_v0, 512  ;;  %280 = vst [vmem:[#allocation2 + $0x40] sm:$0xf] %v51_v3  ;;  %702 = vst [vmem:[#allocation3 + $0x120] sm:$0xf] %v51_v3  ;;  %s1039_s27 = smov 113  }
  0x27   :  { %397 = vst.msk [vmem:[#allocation2 + $0x84] ss:$8 sm:$0xf] %vm394_vm0, %v1035_v1  ;;  %707 = vst.msk [vmem:[#allocation3 + $0x124] ss:$8 sm:$0xf] %vm394_vm0, %v1035_v1 }
  0x28   :  { %283 = vst [vmem:[#allocation2 + $0x58] sm:$0xf] %v169_v4  ;;  %705 = vst [vmem:[#allocation3 + $0x138] sm:$0xf] %v169_v4  ;;  %s1040_s28 = smov 16   ;;  %s1041_s29 = smov 1  }
  0x29   :  { %281 = vst [vmem:[#allocation2 + $0x48] sm:$0xf] %v168_v5  ;;  %703 = vst [vmem:[#allocation3 + $0x128] sm:$0xf] %v168_v5  ;;  %377 = vrot.lane.b32.xlu1 %v169_v4, %s1036_s0  ;;  %284 = vrot.lane.b32.xlu0 %v51_v3, %s1037_s2  ;;  %s1042_s30 = smov 17   ;;  %s1043_s4 = smov 15  }
  0x2a   :  { %v1044_v6 = vmov 0   ;;  %v1111_v7 = vand.u32 127, %v53_v0  ;;  %v1045_v25 = vmov 0.0   ;;  %vm436_vm15 = vcmask 1041408   ;;  %s1047_s5 = smov [#allocation10]  }
  0x2b   :  { %484 = vmatprep.mubr.bf16.mxu0 %v1044_v6  ;;  %525 = vmatprep.mubr.bf16.mxu1 %v1044_v6  ;;  %vm437_vm0 = vcmask 1042432   ;;  %v1046_v51 = vmov 65535   ;;  %s882_s6 = sshll.u32 %s1047_s5, 4  ;;  %s883_s6 = int_to_ptr.vmem [resolvable:$true] %s882_s6 }
  0x2c   :  { %v56_v8 = vadd.s32 256, %v1111_v7  ;;  %v57_v9 = vadd.s32 384, %v1111_v7  ;;  %v55_v12 = vadd.s32 128, %v1111_v7  ;;  %v58_v15 = vand.u32 255, %v1111_v7  ;;  %s1006_s7 = scalar_lea.vmem %s883_s6, 512  ;;  %p1011_p2 = scmp.lt.s32.totalorder %s883_s6, %s883_s6 }
  0x2d   :  { %286 = vrot.lane.b32.xlu1 %v168_v5, %s1037_s2  ;;  %373 = vrot.lane.b32.xlu0 %v168_v5, %s1036_s0  ;;  %vm1640_vm11 = vcmp.lt.s32.totalorder %v1111_v7, 111  ;;  %vm1635_vm14 = vcmp.lt.s32.totalorder %v1111_v7, 127  ;;  %v438_v52 = vsel %vm436_vm15, 4294967295, %v1046_v51  ;;  %p1007_p1 = scmp.ne.s32.totalorder %s883_s6, %s1006_s7  ;;  %p1012_p3 = scmp.lt.s32.totalorder %s1006_s7, %s1006_s7 }
  0x2e   :  { %v60_v10 = vand.u32 255, %v56_v8  ;;  %v61_v11 = vand.u32 255, %v57_v9  ;;  %v59_v18 = vand.u32 255, %v55_v12  ;;  %v1127_v19 = vand.u32 15, %v58_v15 }
  0x2f   :  { %v1129_v20 = vshra.s32 %v58_v15, 4  ;;  %v439_v61 = vsel %vm437_vm0, %v438_v52, 0  ;;  %p1013_p4 = por %p1012_p3, %p1011_p2 }
  0x30   :  { %v1116_v13 = vand.u32 15, %v60_v10  ;;  %v1118_v14 = vshra.s32 %v60_v10, 4  ;;  %v1121_v16 = vand.u32 15, %v61_v11  ;;  %v1123_v17 = vshra.s32 %v61_v11, 4 }
  0x31   :  { %290 = vrot.lane.b32.xlu1 %v169_v4, %s1037_s2  ;;  %288 = vrot.lane.b32.xlu0 %v52_v2, %s1037_s2  ;;  %v1133_v21 = vand.u32 15, %v59_v18  ;;  %v1135_v22 = vshra.s32 %v59_v18, 4  ;;  %vm98_vm7 = vcmp.le.s32.totalorder %v1127_v19, 14  ;;  %vm130_vm8 = vcmp.le.s32.totalorder %v1129_v20, 14  ;;  %p1014_p5 = pnand %p1013_p4, %p1007_p1 }
  0x32   :  { %vm100_vm1 = vcmp.le.s32.totalorder %v1116_v13, 14  ;;  %vm132_vm2 = vcmp.le.s32.totalorder %v1118_v14, 14  ;;  %vm101_vm3 = vcmp.le.s32.totalorder %v1121_v16, 14  ;;  %vm133_vm4 = vcmp.le.s32.totalorder %v1123_v17, 14  ;;  %vm154_vm12 = vmand %vm130_vm8, %vm98_vm7 }
  0x33   :  { %vm156_vm5 = vmand %vm132_vm2, %vm100_vm1  ;;  %vm99_vm9 = vcmp.le.s32.totalorder %v1133_v21, 14  ;;  %vm131_vm10 = vcmp.le.s32.totalorder %v1135_v22, 14  ;;  %v1174_v34 = vsel %vm98_vm7, 1.0, %v1045_v25  ;;  %v1177_v35 = vsel %vm154_vm12, 1.0, %v1045_v25 }
  0x34   :  { %vm157_vm6 = vmand %vm133_vm4, %vm101_vm3  ;;  %v1151_v26 = vsel %vm156_vm5, 1.0, %v1045_v25  ;;  %v1194_v45 = vsel %vm101_vm3, 1.0, %v1045_v25  ;;  %v1199_v46 = vsel %vm99_vm9, 1.0, %v1045_v25  ;;  %v1204_v47 = vsel %vm100_vm1, 1.0, %v1045_v25 }
  0x35   :  { %340 = vrot.lane.b32.xlu1 %v168_v5, %s1038_s26  ;;  %338 = vrot.lane.b32.xlu0 %v51_v3, %s1038_s26  ;;  %v1154_v27 = vsel %vm157_vm6, 1.0, %v1045_v25  ;;  %vm155_vm13 = vmand %vm131_vm10, %vm99_vm9  ;;  %vm1636_vm5 = vcmp.lt.s32.totalorder %v1111_v7, 112  ;;  %v1221_v59 = vsel %vm130_vm8, 1.0, %v1045_v25  ;;  %v1228_v8 = vsel %vm133_vm4, 1.0, %v1045_v25 }
  0x36   :  { %v1180_v36 = vsel %vm155_vm13, 1.0, %v1045_v25  ;;  %vm74_vm6 = vcmp.ge.s32.totalorder %v1127_v19, 1  ;;  %v1235_v12 = vsel %vm131_vm10, 1.0, %v1045_v25  ;;  %v1240_v15 = vsel %vm132_vm2, 1.0, %v1045_v25 }
  0x37   :  { %vm1638_vm12 = vcmp.lt.s32.totalorder %v1111_v7, 113  ;;  %vm77_vm13 = vcmp.ge.s32.totalorder %v1121_v16, 1  ;;  %vm134_vm15 = vmand %vm130_vm8, %vm74_vm6  ;;  %vm75_vm0 = vcmp.ge.s32.totalorder %v1133_v21, 1 }
  0x38   :  { %vm1263_vm8 = vmand %vm133_vm4, %vm77_vm13 }
  0x39   :  { %344 = vrot.lane.b32.xlu1 %v169_v4, %s1038_s26  ;;  %342 = vrot.lane.b32.xlu0 %v52_v2, %s1038_s26 }
  0x3d   :  { %319 = vrot.lane.b32.xlu1 %v168_v5, %s1039_s27  ;;  %317 = vrot.lane.b32.xlu0 %v51_v3, %s1039_s27 }
  0x41   :  { %323 = vrot.lane.b32.xlu1 %v169_v4, %s1039_s27  ;;  %321 = vrot.lane.b32.xlu0 %v52_v2, %s1039_s27 }
  0x45   :  { %195 = vrot.lane.b32.xlu1 %v168_v5, %s1040_s28  ;;  %193 = vrot.lane.b32.xlu0 %v51_v3, %s1040_s28 }
  0x49   :  { %199 = vrot.lane.b32.xlu1 %v169_v4, %s1040_s28  ;;  %197 = vrot.lane.b32.xlu0 %v52_v2, %s1040_s28 }
  0x4d   :  { %249 = vrot.lane.b32.xlu1 %v168_v5, %s1041_s29  ;;  %247 = vrot.lane.b32.xlu0 %v51_v3, %s1041_s29 }
  0x51   :  { %253 = vrot.lane.b32.xlu1 %v169_v4, %s1041_s29  ;;  %251 = vrot.lane.b32.xlu0 %v52_v2, %s1041_s29 }
  0x55   :  { %174 = vrot.lane.b32.xlu1 %v168_v5, %s1042_s30  ;;  %172 = vrot.lane.b32.xlu0 %v51_v3, %s1042_s30 }
  0x59   :  { %178 = vrot.lane.b32.xlu1 %v169_v4, %s1042_s30  ;;  %176 = vrot.lane.b32.xlu0 %v52_v2, %s1042_s30 }
  0x5d   :  { %228 = vrot.lane.b32.xlu1 %v168_v5, %s1043_s4  ;;  %226 = vrot.lane.b32.xlu0 %v51_v3, %s1043_s4 }
  0x61   :  { %232 = vrot.lane.b32.xlu1 %v169_v4, %s1043_s4  ;;  %230 = vrot.lane.b32.xlu0 %v52_v2, %s1043_s4 }
  0x97   :  { %v376_v23 = vpop.permute.xlu1 %375  ;;  %v372_v24 = vpop.permute.xlu0 %371 }
  0x9b   :  { %v378_v28 = vpop.permute.xlu1 %377  ;;  %v285_v29 = vpop.permute.xlu0 %284 }
  0x9c   :  { %v380_v30 = vsel %vm1640_vm11, %v376_v23, %v378_v28  ;;  %v383_v31 = vsel %vm1640_vm11, %v378_v28, %v372_v24 }
  0x9d   :  { %v386_v32 = vmul.f32 %v1151_v26, %v380_v30  ;;  %v387_v33 = vmul.f32 %v1154_v27, %v383_v31 }
  0x9f   :  { %390 = vst [vmem:[#allocation2 + $0x90] sm:$0xf] %v386_v32  ;;  %391 = vst [vmem:[#allocation2 + $0x98] sm:$0xf] %v387_v33  ;;  %v287_v37 = vpop.permute.xlu1 %286  ;;  %v374_v38 = vpop.permute.xlu0 %373 }
  0xa0   :  { %v295_v39 = vsel %vm1635_vm14, %v285_v29, %v287_v37  ;;  %v381_v40 = vsel %vm1640_vm11, %v374_v38, %v376_v23  ;;  %v382_v41 = vsel %vm1640_vm11, %v372_v24, %v374_v38 }
  0xa1   :  { %v297_v42 = vmul.f32 %v1174_v34, %v295_v39  ;;  %v384_v43 = vmul.f32 %v1177_v35, %v382_v41  ;;  %v385_v44 = vmul.f32 %v1180_v36, %v381_v40 }
  0xa3   :  { %v305_v48 = vrot.slane %v297_v42, 4  ;;  %388 = vst [vmem:[#allocation2 + $0x80] sm:$0xf] %v384_v43  ;;  %389 = vst [vmem:[#allocation2 + $0x88] sm:$0xf] %v385_v44  ;;  %v291_v49 = vpop.permute.xlu1 %290  ;;  %v289_v50 = vpop.permute.xlu0 %288  ;;  %v1268_v44 = vsel %vm134_vm15, 1.0, %v1045_v25 }
  0xa4   :  { %v296_v53 = vsel %vm1635_vm14, %v291_v49, %v285_v29  ;;  %v293_v54 = vsel %vm1635_vm14, %v289_v50, %v291_v49  ;;  %v294_v55 = vsel %vm1635_vm14, %v287_v37, %v289_v50  ;;  %vm76_vm14 = vcmp.ge.s32.totalorder %v1116_v13, 1 }
  0xa5   :  { %313 = vst [vmem:[#allocation2 + $0x40] sm:$0xf0] %v305_v48  ;;  %v300_v56 = vmul.f32 %v1194_v45, %v296_v53  ;;  %v298_v57 = vmul.f32 %v1199_v46, %v294_v55  ;;  %v299_v58 = vmul.f32 %v1204_v47, %v293_v54  ;;  %vm136_vm4 = vmand %vm132_vm2, %vm76_vm14  ;;  %vm71_vm2 = vcmp.ge.s32.totalorder %v1135_v22, 1 }
  0xa6   :  { %v419_v60 = vld [vmem:[#allocation2 + $0x98] sm:$0x1f]  ;;  %v418_v62 = vld [vmem:[#allocation2 + $0x90] sm:$0x1f]  ;;  %vm72_vm15 = vcmp.ge.s32.totalorder %v1118_v14, 1  ;;  %v1342_v43 = vsel %vm75_vm0, 1.0, %v1045_v25 }
  0xa7   :  { %v308_v63 = vrot.slane %v300_v56, 4  ;;  %v306_v0 = vrot.slane %v298_v57, 4  ;;  %v307_v1 = vrot.slane %v299_v58, 4  ;;  %v341_v2 = vpop.permute.xlu1 %340  ;;  %v339_v3 = vpop.permute.xlu0 %338  ;;  %v431_v4 = vpack.c.bf16 %v419_v60, %v419_v60 }
  0xa8   :  { %v349_v5 = vsel %vm1636_vm5, %v339_v3, %v341_v2  ;;  %v430_v9 = vpack.c.bf16 %v418_v62, %v418_v62  ;;  %v1284_v57 = vsel %vm1263_vm8, 1.0, %v1045_v25  ;;  %v1290_v60 = vsel %vm136_vm4, 1.0, %v1045_v25 }
  0xa9   :  { %316 = vst [vmem:[#allocation2 + $0x58] sm:$0xf0] %v308_v63  ;;  %314 = vst [vmem:[#allocation2 + $0x48] sm:$0xf0] %v306_v0  ;;  %v351_v10 = vmul.f32 %v1221_v59, %v349_v5  ;;  %v450_v11 = vand.u32 %v439_v61, %v431_v4  ;;  %v1306_v5 = vsel %vm71_vm2, 1.0, %v1045_v25  ;;  %vm73_vm8 = vcmp.ge.s32.totalorder %v1123_v17, 1 }
  0xaa   :  { %315 = vst [vmem:[#allocation2 + $0x50] sm:$0xf0] %v307_v1  ;;  %v447_v18 = vand.u32 %v439_v61, %v430_v9  ;;  %v417_v23 = vld [vmem:[#allocation2 + $0x88] sm:$0x1f]  ;;  %v416_v24 = vld [vmem:[#allocation2 + $0x80] sm:$0x1f]  ;;  %vm81_vm11 = vmand %vm73_vm8, %vm77_vm13 }
  0xab   :  { %v359_v28 = vrot.slane %v351_v10, 4  ;;  %503 = vmatprep.subr.bf16.mxu1 %v450_v11  ;;  %v345_v29 = vpop.permute.xlu1 %344  ;;  %v343_v30 = vpop.permute.xlu0 %342  ;;  %v429_v31 = vpack.c.bf16 %v417_v23, %v417_v23  ;;  %v428_v32 = vpack.c.bf16 %v416_v24, %v416_v24  ;;  %v1322_v24 = vsel %vm72_vm15, 1.0, %v1045_v25 }
  0xac   :  { %v350_v33 = vsel %vm1636_vm5, %v345_v29, %v339_v3  ;;  %v347_v37 = vsel %vm1636_vm5, %v343_v30, %v345_v29  ;;  %v348_v38 = vsel %vm1636_vm5, %v341_v2, %v343_v30  ;;  %504 = vmatpush1.bf16.msra.mxu1 %v447_v18  ;;  %vm135_vm5 = vmand %vm131_vm10, %vm75_vm0  ;;  %vm1637_vm10 = vcmp.lt.s32.totalorder %v1111_v7, 16 }
  0xad   :  { %367 = vst [vmem:[#allocation2 + $0x60] sm:$0xf0] %v359_v28  ;;  %v354_v39 = vmul.f32 %v1228_v8, %v350_v33  ;;  %v352_v40 = vmul.f32 %v1235_v12, %v348_v38  ;;  %v353_v41 = vmul.f32 %v1240_v15, %v347_v37  ;;  %v444_v42 = vand.u32 %v439_v61, %v429_v31 }
  0xae   :  { %v441_v48 = vand.u32 %v439_v61, %v428_v32  ;;  %v1287_v58 = vsel %vm135_vm5, 1.0, %v1045_v25  ;;  %vm70_vm5 = vcmp.ge.s32.totalorder %v1129_v20, 1  ;;  %v1327_v28 = vsel %vm73_vm8, 1.0, %v1045_v25 }
  0xaf   :  { %v362_v49 = vrot.slane %v354_v39, 4  ;;  %v360_v50 = vrot.slane %v352_v40, 4  ;;  %v361_v52 = vrot.slane %v353_v41, 4  ;;  %v320_v53 = vpop.permute.xlu1 %319  ;;  %462 = vmatprep.subr.bf16.mxu0 %v444_v42  ;;  %v318_v54 = vpop.permute.xlu0 %317  ;;  %v1317_v23 = vsel %vm70_vm5, 1.0, %v1045_v25 }
  0xb0   :  { %v328_v55 = vsel %vm1638_vm12, %v318_v54, %v320_v53  ;;  %463 = vmatpush1.bf16.msra.mxu0 %v441_v48  ;;  %vm1639_vm4 = vcmp.lt.s32.totalorder %v1111_v7, 1  ;;  %v409_v41 = vld [vmem:[#allocation2 + $0x48] sm:$0xff] }
  0xb1   :  { %370 = vst [vmem:[#allocation2 + $0x78] sm:$0xf0] %v362_v49  ;;  %368 = vst [vmem:[#allocation2 + $0x68] sm:$0xf0] %v360_v50  ;;  %v330_v56 = vmul.f32 %v1268_v44, %v328_v55 }
  0xb2   :  { %369 = vst [vmem:[#allocation2 + $0x70] sm:$0xf0] %v361_v52 }
  0xb3   :  { %334 = vst [vmem:[#allocation2 + $0x60] sm:$0xf] %v330_v56  ;;  %v324_v61 = vpop.permute.xlu1 %323  ;;  %v322_v62 = vpop.permute.xlu0 %321 }
  0xb4   :  { %v329_v63 = vsel %vm1638_vm12, %v324_v61, %v318_v54  ;;  %v326_v0 = vsel %vm1638_vm12, %v322_v62, %v324_v61  ;;  %v327_v1 = vsel %vm1638_vm12, %v320_v53, %v322_v62  ;;  %v411_v62 = vld [vmem:[#allocation2 + $0x58] sm:$0xff]  ;;  %vm180_vm12 = vcmp.lt.s32.totalorder %v1111_v7, 17 }
  0xb5   :  { %v333_v2 = vmul.f32 %v1284_v57, %v329_v63  ;;  %v331_v3 = vmul.f32 %v1287_v58, %v327_v1  ;;  %v332_v4 = vmul.f32 %v1290_v60, %v326_v0  ;;  %v408_v63 = vld [vmem:[#allocation2 + $0x40] sm:$0xff]  ;;  %v410_v0 = vld [vmem:[#allocation2 + $0x50] sm:$0xff] }
  0xb7   :  { %337 = vst [vmem:[#allocation2 + $0x78] sm:$0xf] %v333_v2  ;;  %335 = vst [vmem:[#allocation2 + $0x68] sm:$0xf] %v331_v3  ;;  %v196_v9 = vpop.permute.xlu1 %195  ;;  %v194_v10 = vpop.permute.xlu0 %193 }
  0xb8   :  { %336 = vst [vmem:[#allocation2 + $0x70] sm:$0xf] %v332_v4  ;;  %v204_v11 = vsel %vm1637_vm10, %v194_v10, %v196_v9 }
  0xb9   :  { %v207_v18 = vmul.f32 %v1306_v5, %v204_v11  ;;  %v1355_v11 = vsel %vm76_vm14, 1.0, %v1045_v25 }
  0xba   :  { %v412_v42 = vld [vmem:[#allocation2 + $0x60] sm:$0xff] }
  0xbb   :  { %v215_v29 = vrot.slane %v207_v18, 4  ;;  %v200_v30 = vpop.permute.xlu1 %199  ;;  %v198_v31 = vpop.permute.xlu0 %197  ;;  %v424_v3 = vpack.c.bf16 %v412_v42, %v408_v63  ;;  %v1360_v18 = vsel %vm77_vm13, 1.0, %v1045_v25  ;;  %vm105_vm13 = vmand %vm73_vm8, %vm101_vm3  ;;  %vm774_vm3 = vcmask 1045504  }
  0xbc   :  { %v205_v32 = vsel %vm1637_vm10, %v200_v30, %v194_v10  ;;  %v202_v33 = vsel %vm1637_vm10, %v198_v31, %v200_v30  ;;  %v203_v37 = vsel %vm1637_vm10, %v196_v9, %v198_v31  ;;  %v1350_v10 = vsel %vm74_vm6, 1.0, %v1045_v25  ;;  %vm79_vm10 = vmand %vm71_vm2, %vm75_vm0 }
  0xbd   :  { %223 = vst [vmem:[#allocation2 + $0x8] sm:$0xf0] %v215_v29  ;;  %v206_v38 = vmul.f32 %v1317_v23, %v205_v32  ;;  %v208_v39 = vmul.f32 %v1322_v24, %v203_v37  ;;  %v209_v40 = vmul.f32 %v1327_v28, %v202_v33  ;;  %vm78_vm0 = vmand %vm70_vm5, %vm74_vm6  ;;  %vm1647_vm8 = vcmp.lt.s32.totalorder %v1111_v7, 113 }
  0xbe   :  { %v413_v48 = vld [vmem:[#allocation2 + $0x68] sm:$0xff]  ;;  %v415_v49 = vld [vmem:[#allocation2 + $0x78] sm:$0xff]  ;;  %vm104_vm6 = vmand %vm72_vm15, %vm100_vm1  ;;  %vm432_vm1 = vcmask 302080  }
  0xbf   :  { %v414_v50 = vld [vmem:[#allocation2 + $0x70] sm:$0xff]  ;;  %v214_v52 = vrot.slane %v206_v38, 4  ;;  %v216_v53 = vrot.slane %v208_v39, 4  ;;  %v217_v54 = vrot.slane %v209_v40, 4  ;;  %v250_v55 = vpop.permute.xlu1 %249  ;;  %v248_v56 = vpop.permute.xlu0 %247  ;;  %v425_v61 = vpack.c.bf16 %v413_v48, %v409_v41 }
  0xc0   :  { %v258_v1 = vsel %vm1639_vm4, %v248_v56, %v250_v55  ;;  %v427_v2 = vpack.c.bf16 %v415_v49, %v411_v62  ;;  %v426_v4 = vpack.c.bf16 %v414_v50, %v410_v0  ;;  %v1381_v41 = vsel %vm79_vm10, 1.0, %v1045_v25 }
  0xc1   :  { %222 = vst [vmem:[#allocation2] sm:$0xf0] %v214_v52  ;;  %224 = vst [vmem:[#allocation2 + $0x10] sm:$0xf0] %v216_v53  ;;  %v261_v9 = vmul.f32 %v1342_v43, %v258_v1  ;;  %464 = vmatprep.subr.bf16.mxu0 %v425_v61  ;;  %v1401_v61 = vsel %vm81_vm11, 1.0, %v1045_v25  ;;  %vm234_vm11 = vcmp.lt.s32.totalorder %v1111_v7, 15 }
  0xc2   :  { %225 = vst [vmem:[#allocation2 + $0x18] sm:$0xf0] %v217_v54  ;;  %505 = vmatprep.subr.bf16.mxu1 %v427_v2  ;;  %465 = vmatpush1.bf16.msra.mxu0 %v424_v3  ;;  %v1439_v14 = vsel %vm104_vm6, 1.0, %v1045_v25  ;;  %vm775_vm10 = vcmask 1046528  }
  0xc3   :  { %v269_v29 = vrot.slane %v261_v9, 4  ;;  %506 = vmatpush1.bf16.msra.mxu1 %v426_v4  ;;  %v254_v30 = vpop.permute.xlu1 %253  ;;  %v252_v31 = vpop.permute.xlu0 %251 }
  0xc4   :  { %v259_v32 = vsel %vm1639_vm4, %v254_v30, %v248_v56  ;;  %v256_v33 = vsel %vm1639_vm4, %v252_v31, %v254_v30  ;;  %v257_v37 = vsel %vm1639_vm4, %v250_v55, %v252_v31  ;;  %vm80_vm4 = vmand %vm72_vm15, %vm76_vm14  ;;  %v1395_v55 = vsel %vm78_vm0, 1.0, %v1045_v25 }
  0xc5   :  { %277 = vst [vmem:[#allocation2 + $0x28] sm:$0xf0] %v269_v29  ;;  %v260_v38 = vmul.f32 %v1350_v10, %v259_v32  ;;  %v262_v39 = vmul.f32 %v1355_v11, %v257_v37  ;;  %v263_v40 = vmul.f32 %v1360_v18, %v256_v33  ;;  %v1398_v56 = vsel %vm80_vm4, 1.0, %v1045_v25  ;;  %vm103_vm14 = vmand %vm71_vm2, %vm99_vm9 }
  0xc6   :  { %vm102_vm9 = vmand %vm70_vm5, %vm98_vm7  ;;  %v1422_v21 = vsel %vm103_vm14, 1.0, %v1045_v25  ;;  %v1442_v30 = vsel %vm105_vm13, 1.0, %v1045_v25  ;;  %vm1643_vm7 = vcmp.lt.s32.totalorder %v1111_v7, 111 }
  0xc7   :  { %v268_v42 = vrot.slane %v260_v38, 4  ;;  %v270_v48 = vrot.slane %v262_v39, 4  ;;  %v271_v49 = vrot.slane %v263_v40, 4  ;;  %v175_v50 = vpop.permute.xlu1 %174  ;;  %v173_v52 = vpop.permute.xlu0 %172  ;;  %v1436_v13 = vsel %vm102_vm9, 1.0, %v1045_v25  ;;  %vm1644_vm2 = vmmov %vm1643_vm7 }
  0xc8   :  { %v183_v53 = vsel %vm180_vm12, %v173_v52, %v175_v50  ;;  %vm1645_vm5 = vmmov %vm1644_vm2  ;;  %vm1651_vm9 = vcmp.lt.s32.totalorder %v1111_v7, 112 }
  0xc9   :  { %276 = vst [vmem:[#allocation2 + $0x20] sm:$0xf0] %v268_v42  ;;  %278 = vst [vmem:[#allocation2 + $0x30] sm:$0xf0] %v270_v48  ;;  %v186_v54 = vmul.f32 %v1381_v41, %v183_v53 }
  0xca   :  { %279 = vst [vmem:[#allocation2 + $0x38] sm:$0xf0] %v271_v49  ;;  %vm1646_vm15 = vmmov %vm1644_vm2 }
  0xcb   :  { %190 = vst [vmem:[#allocation2 + $0x8] sm:$0xf] %v186_v54  ;;  %v179_v62 = vpop.permute.xlu1 %178  ;;  %v177_v63 = vpop.permute.xlu0 %176  ;;  %vm1648_vm4 = vmmov %vm1647_vm8 }
  0xcc   :  { %v184_v0 = vsel %vm180_vm12, %v179_v62, %v173_v52  ;;  %v181_v1 = vsel %vm180_vm12, %v177_v63, %v179_v62  ;;  %v182_v2 = vsel %vm180_vm12, %v175_v50, %v177_v63  ;;  %vm1649_vm0 = vmmov %vm1648_vm4 }
  0xcd   :  { %v185_v3 = vmul.f32 %v1395_v55, %v184_v0  ;;  %v187_v4 = vmul.f32 %v1398_v56, %v182_v2  ;;  %v188_v9 = vmul.f32 %v1401_v61, %v181_v1  ;;  %v399_v1 = vld [vmem:[#allocation7] sm:$0xf]  ;;  %vm1650_vm14 = vmmov %vm1649_vm0 }
  0xce   :  { %vm1652_vm6 = vmmov %vm1651_vm9 }
  0xcf   :  { %189 = vst [vmem:[#allocation2] sm:$0xf] %v185_v3  ;;  %191 = vst [vmem:[#allocation2 + $0x10] sm:$0xf] %v187_v4  ;;  %v229_v22 = vpop.permute.xlu1 %228  ;;  %v227_v29 = vpop.permute.xlu0 %226 }
  0xd0   :  { %192 = vst [vmem:[#allocation2 + $0x18] sm:$0xf] %v188_v9  ;;  %v237_v19 = vsel %vm234_vm11, %v227_v29, %v229_v22  ;;  %vm1653_vm13 = vmmov %vm1652_vm6 }
  0xd1   :  { %v240_v20 = vmul.f32 %v1422_v21, %v237_v19 }
  0xd2   :  { %v401_v25 = vld [vmem:[#allocation2 + $0x8] sm:$0xff] }
  0xd3   :  { %244 = vst [vmem:[#allocation2 + $0x28] sm:$0xf] %v240_v20  ;;  %v233_v31 = vpop.permute.xlu1 %232  ;;  %v231_v16 = vpop.permute.xlu0 %230 }
  0xd4   :  { %v238_v17 = vsel %vm234_vm11, %v233_v31, %v227_v29  ;;  %v235_v32 = vsel %vm234_vm11, %v231_v16, %v233_v31  ;;  %v236_v33 = vsel %vm234_vm11, %v229_v22, %v231_v16 }
  0xd5   :  { %v239_v37 = vmul.f32 %v1436_v13, %v238_v17  ;;  %v241_v38 = vmul.f32 %v1439_v14, %v236_v33  ;;  %v242_v39 = vmul.f32 %v1442_v30, %v235_v32 }
  0xd6   :  { %v400_v48 = vld [vmem:[#allocation2] sm:$0xff]  ;;  %v402_v50 = vld [vmem:[#allocation2 + $0x10] sm:$0xff] }
  0xd7   :  { %243 = vst [vmem:[#allocation2 + $0x20] sm:$0xf] %v239_v37  ;;  %245 = vst [vmem:[#allocation2 + $0x30] sm:$0xf] %v241_v38  ;;  %v403_v49 = vld [vmem:[#allocation2 + $0x18] sm:$0xff] }
  0xd8   :  { %246 = vst [vmem:[#allocation2 + $0x38] sm:$0xf] %v242_v39 }
  0xda   :  { %v405_v40 = vld [vmem:[#allocation2 + $0x28] sm:$0xff] }
  0xdb   :  { %v421_v42 = vpack.c.bf16 %v405_v40, %v401_v25  ;;  %v746_v25 = vld [vmem:[#allocation3 + $0x120] sm:$0x1f]  ;;  %v776_v40 = vsel %vm774_vm3, 4294967295, %v1046_v51  ;;  %vm1655_vm3 = vcmp.lt.s32.totalorder %v1111_v7, 127 }
  0xdd   :  { %466 = vmatprep.subr.bf16.mxu0 %v421_v42 }
  0xde   :  { %v404_v52 = vld [vmem:[#allocation2 + $0x20] sm:$0xff]  ;;  %v406_v54 = vld [vmem:[#allocation2 + $0x30] sm:$0xff] }
  0xdf   :  { %v407_v53 = vld [vmem:[#allocation2 + $0x38] sm:$0xff]  ;;  %v420_v62 = vpack.c.bf16 %v404_v52, %v400_v48  ;;  %v422_v0 = vpack.c.bf16 %v406_v54, %v402_v50  ;;  %v747_v48 = vld [vmem:[#allocation3 + $0x128] sm:$0x1f] }
  0xe0   :  { %v423_v63 = vpack.c.bf16 %v407_v53, %v403_v49 }
  0xe1   :  { %467 = vmatpush1.bf16.msra.mxu0 %v420_v62  ;;  %v748_v62 = vld [vmem:[#allocation3 + $0x130] sm:$0x1f] }
  0xe2   :  { %507 = vmatprep.subr.bf16.mxu1 %v423_v63 }
  0xe3   :  { %508 = vmatpush1.bf16.msra.mxu1 %v422_v0 }
  0xe4   :  { %924 = vmatmul.mubr.msk.bf16.vlgmr.msra.gmra.mxu0 %vm432_vm1, %v399_v1 }
  0xe5   :  { %822 = vmatprep.mubr.bf16.mxu0 %v1044_v6 }
  0xe6   :  { %925 = vmatmul.mubr.msk.bf16.vlgmr.msra.gmra.mxu1 %vm432_vm1, %v399_v1  ;;  %vm1654_vm1 = vmmov %vm1652_vm6 }
  0xe7   :  { %863 = vmatprep.mubr.bf16.mxu1 %v1044_v6 }
 0x1a4   :  { %v486_v2 = vpop.f32.mrf.mxu0 }
 0x1a5   :  { %v1455_v3 = vmax.f32 %v486_v2, 0.0  ;;  %v777_v2 = vsel %vm775_vm10, %v776_v40, 0 }
 0x1a6   :  { %v527_v4 = vpop.f32.mrf.mxu1  ;;  %v488_v22 = vpop.f32.mrf.mxu0 }
 0x1a7   :  { %v1457_v9 = vmax.f32 %v527_v4, 0.0  ;;  %v1459_v29 = vmax.f32 %v488_v22, 0.0  ;;  %682 = vrot.lane.b32.xlu0 %v1455_v3, %s1036_s0 }
 0x1a8   :  { %v529_v19 = vpop.f32.mrf.mxu1  ;;  %v490_v31 = vpop.f32.mrf.mxu0 }
 0x1a9   :  { %v1463_v20 = vmax.f32 %v529_v19, 0.0  ;;  %684 = vrot.lane.b32.xlu1 %v1459_v29, %s1036_s0 }
 0x1aa   :  { %v531_v16 = vpop.f32.mrf.mxu1  ;;  %v491_v6 = vpop.f32.mrf.mxu0 }
 0x1ab   :  { %686 = vrot.lane.b32.xlu0 %v1457_v9, %s1036_s0 }
 0x1ac   :  { %v532_v17 = vpop.f32.mrf.mxu1 }
 0x1ad   :  { %688 = vrot.lane.b32.xlu1 %v1463_v20, %s1036_s0 }
 0x1af   :  { %642 = vrot.lane.b32.xlu0 %v1455_v3, %s1039_s27 }
 0x1b1   :  { %644 = vrot.lane.b32.xlu1 %v1459_v29, %s1039_s27 }
 0x1b3   :  { %646 = vrot.lane.b32.xlu0 %v1457_v9, %s1039_s27 }
 0x1b5   :  { %648 = vrot.lane.b32.xlu1 %v1463_v20, %s1039_s27 }
 0x1b7   :  { %662 = vrot.lane.b32.xlu0 %v1455_v3, %s1038_s26 }
 0x1b9   :  { %664 = vrot.lane.b32.xlu1 %v1459_v29, %s1038_s26 }
 0x1bb   :  { %666 = vrot.lane.b32.xlu0 %v1457_v9, %s1038_s26 }
 0x1bd   :  { %668 = vrot.lane.b32.xlu1 %v1463_v20, %s1038_s26 }
 0x1bf   :  { %622 = vrot.lane.b32.xlu0 %v1455_v3, %s1037_s2 }
 0x1c1   :  { %624 = vrot.lane.b32.xlu1 %v1459_v29, %s1037_s2 }
 0x1c3   :  { %626 = vrot.lane.b32.xlu0 %v1457_v9, %s1037_s2 }
 0x1c5   :  { %628 = vrot.lane.b32.xlu1 %v1463_v20, %s1037_s2 }
 0x1c7   :  { %578 = vrot.lane.b32.xlu0 %v1455_v3, %s1043_s4 }
 0x1c9   :  { %580 = vrot.lane.b32.xlu1 %v1459_v29, %s1043_s4 }
 0x1cb   :  { %582 = vrot.lane.b32.xlu0 %v1457_v9, %s1043_s4 }
 0x1cd   :  { %584 = vrot.lane.b32.xlu1 %v1463_v20, %s1043_s4 }
 0x1cf   :  { %598 = vrot.lane.b32.xlu0 %v1455_v3, %s1041_s29 }
 0x1d1   :  { %600 = vrot.lane.b32.xlu1 %v1459_v29, %s1041_s29 }
 0x1d3   :  { %602 = vrot.lane.b32.xlu0 %v1457_v9, %s1041_s29 }
 0x1d5   :  { %604 = vrot.lane.b32.xlu1 %v1463_v20, %s1041_s29 }
 0x1d7   :  { %538 = vrot.lane.b32.xlu0 %v1455_v3, %s1042_s30 }
 0x1d9   :  { %540 = vrot.lane.b32.xlu1 %v1459_v29, %s1042_s30 }
 0x1db   :  { %542 = vrot.lane.b32.xlu0 %v1457_v9, %s1042_s30 }
 0x1dd   :  { %544 = vrot.lane.b32.xlu1 %v1463_v20, %s1042_s30 }
 0x1df   :  { %558 = vrot.lane.b32.xlu0 %v1455_v3, %s1040_s28 }
 0x1e1   :  { %560 = vrot.lane.b32.xlu1 %v1459_v29, %s1040_s28 }
 0x1e3   :  { %562 = vrot.lane.b32.xlu0 %v1457_v9, %s1040_s28 }
 0x1e5   :  { %564 = vrot.lane.b32.xlu1 %v1463_v20, %s1040_s28 }
 0x219   :  { %v683_v32 = vpop.permute.xlu0 %682 }
 0x21b   :  { %v685_v33 = vpop.permute.xlu1 %684 }
 0x21c   :  { %v692_v37 = vsel %vm1643_vm7, %v683_v32, %v685_v33  ;;  %vm1656_vm7 = vmmov %vm1655_vm3 }
 0x21d   :  { %v694_v38 = vmul.f32 %v1177_v35, %v692_v37  ;;  %v687_v39 = vpop.permute.xlu0 %686  ;;  %v749_v35 = vld [vmem:[#allocation3 + $0x138] sm:$0x1f] }
 0x21e   :  { %v691_v42 = vsel %vm1644_vm2, %v685_v33, %v687_v39  ;;  %vm1657_vm2 = vmmov %vm1655_vm3 }
 0x21f   :  { %v695_v49 = vmul.f32 %v1180_v36, %v691_v42  ;;  %v689_v50 = vpop.permute.xlu1 %688  ;;  %v766_v54 = vpack.c.bf16 %v746_v25, %v694_v38  ;;  %vm1658_vm10 = vmmov %vm1657_vm2 }
 0x220   :  { %v690_v52 = vsel %vm1645_vm5, %v687_v39, %v689_v50  ;;  %v693_v53 = vsel %vm1646_vm15, %v689_v50, %v683_v32  ;;  %vm1659_vm5 = vcmp.lt.s32.totalorder %v1111_v7, 1 }
 0x221   :  { %v696_v63 = vmul.f32 %v1151_v26, %v690_v52  ;;  %v697_v51 = vmul.f32 %v1154_v27, %v693_v53  ;;  %v643_v0 = vpop.permute.xlu0 %642  ;;  %v767_v1 = vpack.c.bf16 %v747_v48, %v695_v49  ;;  %v779_v16 = vand.u32 %v777_v2, %v766_v54  ;;  %vm1660_vm15 = vmmov %vm1659_vm5 }
 0x223   :  { %v645_v4 = vpop.permute.xlu1 %644  ;;  %v782_v22 = vand.u32 %v777_v2, %v767_v1  ;;  %v769_v36 = vpack.c.bf16 %v749_v35, %v697_v51  ;;  %v768_v19 = vpack.c.bf16 %v748_v62, %v696_v63 }
 0x224   :  { %v652_v31 = vsel %vm1647_vm8, %v643_v0, %v645_v4  ;;  %vm1662_vm8 = vmmov %vm1659_vm5 }
 0x225   :  { %v654_v6 = vmul.f32 %v1268_v44, %v652_v31  ;;  %v647_v17 = vpop.permute.xlu0 %646  ;;  %796 = vmatprep.subr.bf16.mxu0 %v782_v22  ;;  %v788_v32 = vand.u32 %v777_v2, %v769_v36  ;;  %v785_v33 = vand.u32 %v777_v2, %v768_v19 }
 0x226   :  { %v651_v26 = vsel %vm1648_vm4, %v645_v4, %v647_v17  ;;  %797 = vmatpush1.bf16.msra.mxu0 %v779_v16  ;;  %vm1663_vm4 = vcmp.lt.s32.totalorder %v1111_v7, 16 }
 0x227   :  { %v655_v27 = vmul.f32 %v1287_v58, %v651_v26  ;;  %v649_v37 = vpop.permute.xlu1 %648  ;;  %837 = vmatprep.subr.bf16.mxu1 %v788_v32 }
 0x228   :  { %v650_v38 = vsel %vm1649_vm0, %v647_v17, %v649_v37  ;;  %v653_v39 = vsel %vm1650_vm14, %v649_v37, %v643_v0  ;;  %838 = vmatpush1.bf16.msra.mxu1 %v785_v33  ;;  %vm1664_vm0 = vmmov %vm1663_vm4 }
 0x229   :  { %v656_v44 = vmul.f32 %v1290_v60, %v650_v38  ;;  %v657_v25 = vmul.f32 %v1284_v57, %v653_v39  ;;  %v663_v40 = vpop.permute.xlu0 %662  ;;  %vm1666_vm14 = vmmov %vm1664_vm0 }
 0x22b   :  { %v665_v42 = vpop.permute.xlu1 %664 }
 0x22c   :  { %v672_v48 = vsel %vm1651_vm9, %v663_v40, %v665_v42  ;;  %vm770_vm9 = vcmask 629760  }
 0x22d   :  { %v674_v58 = vmul.f32 %v1221_v59, %v672_v48  ;;  %v667_v49 = vpop.permute.xlu0 %666 }
 0x22e   :  { %v671_v50 = vsel %vm1652_vm6, %v665_v42, %v667_v49 }
 0x22f   :  { %v675_v52 = vmul.f32 %v1235_v12, %v671_v50  ;;  %v669_v53 = vpop.permute.xlu1 %668  ;;  %v762_v59 = vpack.c.bf16 %v674_v58, %v654_v6 }
 0x230   :  { %v670_v54 = vsel %vm1653_vm13, %v667_v49, %v669_v53  ;;  %v673_v57 = vsel %vm1654_vm1, %v669_v53, %v663_v40 }
 0x231   :  { %v676_v60 = vmul.f32 %v1240_v15, %v670_v54  ;;  %v677_v35 = vmul.f32 %v1228_v8, %v673_v57  ;;  %v623_v62 = vpop.permute.xlu0 %622  ;;  %v763_v63 = vpack.c.bf16 %v675_v52, %v655_v27 }
 0x233   :  { %v625_v51 = vpop.permute.xlu1 %624  ;;  %798 = vmatprep.subr.bf16.mxu0 %v763_v63  ;;  %v765_v0 = vpack.c.bf16 %v677_v35, %v657_v25  ;;  %v764_v1 = vpack.c.bf16 %v676_v60, %v656_v44 }
 0x234   :  { %v632_v12 = vsel %vm1655_vm3, %v623_v62, %v625_v51  ;;  %799 = vmatpush1.bf16.msra.mxu0 %v762_v59 }
 0x235   :  { %v634_v2 = vmul.f32 %v1174_v34, %v632_v12  ;;  %v627_v4 = vpop.permute.xlu0 %626  ;;  %839 = vmatprep.subr.bf16.mxu1 %v765_v0 }
 0x236   :  { %v631_v15 = vsel %vm1656_vm7, %v625_v51, %v627_v4  ;;  %840 = vmatpush1.bf16.msra.mxu1 %v764_v1 }
 0x237   :  { %v635_v8 = vmul.f32 %v1199_v46, %v631_v15  ;;  %v629_v22 = vpop.permute.xlu1 %628  ;;  %v758_v17 = vpack.c.bf16 %v634_v2, %v1455_v3 }
 0x238   :  { %v630_v36 = vsel %vm1657_vm2, %v627_v4, %v629_v22  ;;  %v633_v19 = vsel %vm1658_vm10, %v629_v22, %v623_v62 }
 0x239   :  { %v636_v31 = vmul.f32 %v1204_v47, %v630_v36  ;;  %v637_v16 = vmul.f32 %v1194_v45, %v633_v19  ;;  %v579_v34 = vpop.permute.xlu0 %578  ;;  %v759_v6 = vpack.c.bf16 %v635_v8, %v1459_v29 }
 0x23b   :  { %v581_v32 = vpop.permute.xlu1 %580  ;;  %800 = vmatprep.subr.bf16.mxu0 %v759_v6  ;;  %v761_v46 = vpack.c.bf16 %v637_v16, %v1463_v20  ;;  %v760_v33 = vpack.c.bf16 %v636_v31, %v1457_v9 }
 0x23c   :  { %v588_v26 = vsel %vm234_vm11, %v579_v34, %v581_v32  ;;  %801 = vmatpush1.bf16.msra.mxu0 %v758_v17 }
 0x23d   :  { %v591_v27 = vmul.f32 %v1422_v21, %v588_v26  ;;  %v583_v47 = vpop.permute.xlu0 %582  ;;  %841 = vmatprep.subr.bf16.mxu1 %v761_v46 }
 0x23e   :  { %v587_v45 = vsel %vm234_vm11, %v581_v32, %v583_v47  ;;  %842 = vmatpush1.bf16.msra.mxu1 %v760_v33 }
 0x23f   :  { %v592_v3 = vmul.f32 %v1439_v14, %v587_v45  ;;  %v585_v29 = vpop.permute.xlu1 %584 }
 0x240   :  { %v586_v20 = vsel %vm234_vm11, %v583_v47, %v585_v29  ;;  %v589_v9 = vsel %vm234_vm11, %v585_v29, %v579_v34  ;;  %vm1661_vm11 = vmmov %vm1659_vm5  ;;  %v709_v34 = vld [vmem:[#allocation9] sm:$0xf] }
 0x241   :  { %v590_v37 = vmul.f32 %v1436_v13, %v589_v9  ;;  %v593_v38 = vmul.f32 %v1442_v30, %v586_v20  ;;  %v599_v21 = vpop.permute.xlu0 %598 }
 0x243   :  { %v601_v39 = vpop.permute.xlu1 %600 }
 0x244   :  { %v608_v44 = vsel %vm1659_vm5, %v599_v21, %v601_v39 }
 0x245   :  { %v611_v25 = vmul.f32 %v1342_v43, %v608_v44  ;;  %v603_v40 = vpop.permute.xlu0 %602 }
 0x246   :  { %v607_v14 = vsel %vm1660_vm15, %v601_v39, %v603_v40 }
 0x247   :  { %v612_v42 = vmul.f32 %v1355_v11, %v607_v14  ;;  %v605_v48 = vpop.permute.xlu1 %604  ;;  %v755_v58 = vpack.c.bf16 %v611_v25, %v591_v27 }
 0x248   :  { %v606_v13 = vsel %vm1661_vm11, %v603_v40, %v605_v48  ;;  %v609_v30 = vsel %vm1662_vm8, %v605_v48, %v599_v21 }
 0x249   :  { %v610_v49 = vmul.f32 %v1350_v10, %v609_v30  ;;  %v613_v50 = vmul.f32 %v1360_v18, %v606_v13  ;;  %v539_v52 = vpop.permute.xlu0 %538  ;;  %802 = vmatprep.subr.bf16.mxu0 %v755_v58  ;;  %v756_v57 = vpack.c.bf16 %v612_v42, %v592_v3 }
 0x24b   :  { %v541_v43 = vpop.permute.xlu1 %540  ;;  %v754_v53 = vpack.c.bf16 %v610_v49, %v590_v37  ;;  %v757_v54 = vpack.c.bf16 %v613_v50, %v593_v38 }
 0x24c   :  { %v548_v11 = vsel %vm180_vm12, %v539_v52, %v541_v43 }
 0x24d   :  { %v551_v60 = vmul.f32 %v1381_v41, %v548_v11  ;;  %v543_v35 = vpop.permute.xlu0 %542  ;;  %803 = vmatpush1.bf16.msra.mxu0 %v754_v53  ;;  %843 = vmatprep.subr.bf16.mxu1 %v757_v54 }
 0x24e   :  { %v547_v62 = vsel %vm180_vm12, %v541_v43, %v543_v35  ;;  %844 = vmatpush1.bf16.msra.mxu1 %v756_v57 }
 0x24f   :  { %v552_v10 = vmul.f32 %v1398_v56, %v547_v62  ;;  %v545_v18 = vpop.permute.xlu1 %544 }
 0x250   :  { %v546_v63 = vsel %vm180_vm12, %v543_v35, %v545_v18  ;;  %v549_v59 = vsel %vm180_vm12, %v545_v18, %v539_v52  ;;  %vm1665_vm12 = vmmov %vm1664_vm0 }
 0x251   :  { %v550_v51 = vmul.f32 %v1395_v55, %v549_v59  ;;  %v553_v41 = vmul.f32 %v1401_v61, %v546_v63  ;;  %v559_v0 = vpop.permute.xlu0 %558 }
 0x253   :  { %v561_v1 = vpop.permute.xlu1 %560 }
 0x254   :  { %v568_v12 = vsel %vm1663_vm4, %v559_v0, %v561_v1 }
 0x255   :  { %v571_v2 = vmul.f32 %v1306_v5, %v568_v12  ;;  %v563_v4 = vpop.permute.xlu0 %562 }
 0x256   :  { %v567_v56 = vsel %vm1664_vm0, %v561_v1, %v563_v4 }
 0x257   :  { %v572_v15 = vmul.f32 %v1322_v24, %v567_v56  ;;  %v565_v8 = vpop.permute.xlu1 %564  ;;  %v751_v22 = vpack.c.bf16 %v571_v2, %v551_v60 }
 0x258   :  { %v566_v55 = vsel %vm1665_vm12, %v563_v4, %v565_v8  ;;  %v569_v61 = vsel %vm1666_vm14, %v565_v8, %v559_v0 }
 0x259   :  { %v570_v36 = vmul.f32 %v1317_v23, %v569_v61  ;;  %v573_v19 = vmul.f32 %v1327_v28, %v566_v55  ;;  %804 = vmatprep.subr.bf16.mxu0 %v751_v22  ;;  %v752_v16 = vpack.c.bf16 %v572_v15, %v552_v10 }
 0x25b   :  { %v750_v5 = vpack.c.bf16 %v570_v36, %v550_v51  ;;  %v753_v31 = vpack.c.bf16 %v573_v19, %v553_v41 }
 0x25d   :  { %805 = vmatpush1.bf16.msra.mxu0 %v750_v5  ;;  %845 = vmatprep.subr.bf16.mxu1 %v753_v31 }
 0x25e   :  { %846 = vmatpush1.bf16.msra.mxu1 %v752_v16 }
 0x260   :  { %926 = vmatmul.mubr.msk.bf16.vlgmr.msra.gmra.mxu0 %vm770_vm9, %v709_v34 }
 0x261   :  { %927 = vmatmul.mubr.msk.bf16.vlgmr.msra.gmra.mxu1 %vm770_vm9, %v709_v34 }
 0x320   :  { %v824_v24 = vpop.f32.mrf.mxu0 }
 0x321   :  { %872 = vst [vmem:[#allocation10] sm:$0xff] %v824_v24  ;;  %v865_v7 = vpop.f32.mrf.mxu1 }
 0x322   :  { %874 = vst [vmem:[#allocation10 + $0x10] sm:$0xff] %v865_v7  ;;  %v826_v23 = vpop.f32.mrf.mxu0 }
 0x323   :  { %873 = vst [vmem:[#allocation10 + $0x8] sm:$0xff] %v826_v23  ;;  %v867_v28 = vpop.f32.mrf.mxu1 }
 0x324   :  { %875 = vst [vmem:[#allocation10 + $0x18] sm:$0xff] %v867_v28  ;;  %v828_v6 = vpop.f32.mrf.mxu0 }
 0x325   :  { %v869_v17 = vpop.f32.mrf.mxu1 }
 0x326   :  { %1017 = shalt.err (!%p1014_p5)
}
 0x327   :  { %885 = dma.vmem_to_hbm [thread:$0]  %s883_s6, 512, %s1634_s3, [#allocation6]   ;;  %v829_v32 = vpop.f32.mrf.mxu0  ;;  %v870_v46 = vpop.f32.mrf.mxu1 }
 0x328   :  { %1030 = dma.done.wait [#allocation6], 512  }
 0x329   :  { %1031 = vsyncadd [#allocation6], 4294966784 }
 0x32a   :  { %889 = vsyncpa [#allocation5], 1 }
 0x32b   :  { %890 = vsyncpa [#allocation8], 1 }
 0x32c   :  { %891 = vsyncpa [#allocation6], 1 }

</bundles_post_ra>
